<compile_context>
chip_gen: v7x
topology: tpu7x:2x2x1
jax: 0.10.0
libtpu: 0.0.40
codegen_flags: <defaults>
</compile_context>

<pallas_src>
import functools

import jax
import jax.numpy as jnp
from jax.experimental import pallas as pl
from jax.experimental.pallas import tpu as pltpu


def _round_up(x, m):
    return (x + m - 1) // m * m


def _default_images_per_step(n):
    """Single-TC chips (v5e/v6e): fold the whole batch into one fat grid step.
    Dual-TC v7x: keep >= 2 grid steps so both TensorCores get work."""
    try:
        kind = jax.devices()[0].device_kind.lower()
    except Exception:  # pragma: no cover
        kind = ""
    dual_tc = ("v7" in kind) or ("7x" in kind)
    ips = (n // 2) if (dual_tc and n >= 2) else n
    return max(1, min(ips, 8))      # defensive cap on the per-step slab size


def _basic_block_kernel(x_ref, w1_ref, b1_ref, w2_ref, b2_ref, mask_ref, o_ref,
                        *, row_stride, images_per_step, lanes_per_image):
    """One group of `images_per_step` images per grid step.

    x_ref    : (1, ips, Cp, Lpad) f32  spatially padded images, flattened
               (h*Wp + w) in the lane (minor) dim
    w1/w2_ref: (Cp, 9*Cp) bf16         conv weights, [co, (kh*3+kw)*Cp + ci]
    b1/b2_ref: (Cp, 1)    f32          biases (broadcast over lanes)
    mask_ref : (1, ips*Lpad) f32       1.0 at interior pixels, else 0.0
    o_ref    : (1, ips, Cp, Lpad) f32  output (halo/tail lanes are garbage and
               are discarded by the wrapper crop)
    """
    ips = images_per_step
    lpi = lanes_per_image

    # Lane-concatenate the images of this step -> one wide (Cp, ips*Lpad) slab,
    # so each conv below is a single MXU matmul with N = ips*Lpad lanes.
    if ips == 1:
        x = x_ref[0, 0]
    else:
        x = jnp.concatenate([x_ref[0, i] for i in range(ips)], axis=1)
    mask = mask_ref[...]                          # (1, ips*Lpad)
    total_lanes = x.shape[-1]

    def conv3x3(a, w_mat):
        # im2col via 9 lane rotations: a shift by s = dh*row_stride + dw in the
        # flattened padded grid reads a[p + s]; roll by (-s) mod total_lanes
        # gives exactly that for every interior pixel p (wrap-around and
        # cross-image bleed only pollute halo/tail lanes, which are masked or
        # discarded).  Rolls stay f32 (XLU); operands are cast to bf16 right
        # before the MXU dot, accumulation stays f32.
        taps = []
        for dh in (-1, 0, 1):
            for dw in (-1, 0, 1):
                s = dh * row_stride + dw
                amt = (-s) % total_lanes
                taps.append(a if amt == 0 else pltpu.roll(a, amt, axis=1))
        patches = jnp.concatenate(taps, axis=0).astype(jnp.bfloat16)  # (9Cp, L)
        return jnp.dot(w_mat, patches, preferred_element_type=jnp.float32)

    # conv1 + bias + ReLU; the mask zeroes the halo so it acts as conv2's pad.
    h1 = jnp.maximum(conv3x3(x, w1_ref[...]) + b1_ref[...], 0.0) * mask
    # conv2 + bias, identity shortcut, final ReLU (BasicBlock order).
    h2 = conv3x3(h1, w2_ref[...]) + b2_ref[...]
    out = jnp.maximum(h2 + x, 0.0).astype(o_ref.dtype)

    # Split the wide slab back into per-image lane-dense (Cp, Lpad) stores
    # (static, 128-aligned slices -> unmasked vst).
    for i in range(ips):
        o_ref[0, i] = out[:, i * lpi:(i + 1) * lpi]


def _pack_weights(w_oihw, cp):
    """(Cout, Cin, 3, 3) -> (Cp, 9*Cp) bf16 with layout [co, (kh*3+kw)*Cp + ci]."""
    cout, cin = w_oihw.shape[0], w_oihw.shape[1]
    w = jnp.transpose(w_oihw, (0, 2, 3, 1))                # (Cout, 3, 3, Cin)
    w = jnp.pad(w, ((0, cp - cout), (0, 0), (0, 0), (0, cp - cin)))
    return w.reshape(cp, 9 * cp).astype(jnp.bfloat16)


def basic_block_nchw(x, w1, b1, w2, b2, *, images_per_step=None):
    """PyTorch-convention entry: x (N,C,H,W); weights (Cout,Cin,3,3); biases (C,)."""
    N, C, H, W = x.shape
    Hp, Wp = H + 2, W + 2
    Cp = _round_up(C, 8)                 # channels -> sublane tile
    L = Hp * Wp
    Lpad = _round_up(L, 128)             # per-image flattened spatial -> lanes

    ips = _default_images_per_step(N) if images_per_step is None else images_per_step
    while N % ips:                       # the block shape must divide the batch
        ips -= 1
    G = N // ips

    # --- layout glue (plain JAX; XLA fuses the pad+reshape+pad chain into a
    #     single HBM pass).  If this block feeds another BasicBlock, keep the
    #     (Cp, Lpad) lane-dense layout between blocks instead of cropping back
    #     to NCHW each time.
    xp = jnp.pad(x, ((0, 0), (0, Cp - C), (1, 1), (1, 1)))        # (N,Cp,Hp,Wp)
    xp = jnp.pad(xp.reshape(N, Cp, L), ((0, 0), (0, 0), (0, Lpad - L)))
    xp = xp.reshape(G, ips, Cp, Lpad)                              # free reshape

    w1m = _pack_weights(w1, Cp)                                    # (Cp,9Cp) bf16
    w2m = _pack_weights(w2, Cp)
    b1c = jnp.pad(b1, (0, Cp - C)).reshape(Cp, 1).astype(jnp.float32)
    b2c = jnp.pad(b2, (0, Cp - C)).reshape(Cp, 1).astype(jnp.float32)

    interior = jnp.zeros((Hp, Wp), jnp.float32).at[1:H + 1, 1:W + 1].set(1.0)
    interior = jnp.pad(interior.reshape(1, L), ((0, 0), (0, Lpad - L)))
    interior = jnp.tile(interior, (1, ips))                        # (1, ips*Lpad)

    kernel = functools.partial(_basic_block_kernel, row_stride=Wp,
                               images_per_step=ips, lanes_per_image=Lpad)

    flops = 2 * (2 * Cp * (9 * Cp) * Lpad) * N           # two convs, 2 flop/MAC
    bytes_accessed = (2 * N * Cp * Lpad * 4               # in + out slabs (f32)
                      + 2 * Cp * 9 * Cp * 2               # bf16 weights
                      + 2 * Cp * 4 + ips * Lpad * 4)      # biases + mask

    out = pl.pallas_call(
        kernel,
        out_shape=jax.ShapeDtypeStruct((G, ips, Cp, Lpad), jnp.float32),
        grid_spec=pltpu.PrefetchScalarGridSpec(
            num_scalar_prefetch=0,
            grid=(G,),
            in_specs=[
                pl.BlockSpec((1, ips, Cp, Lpad), lambda g: (g, 0, 0, 0)),  # imgs
                pl.BlockSpec((Cp, 9 * Cp), lambda g: (0, 0)),     # w1 (resident)
                pl.BlockSpec((Cp, 1), lambda g: (0, 0)),          # b1
                pl.BlockSpec((Cp, 9 * Cp), lambda g: (0, 0)),     # w2
                pl.BlockSpec((Cp, 1), lambda g: (0, 0)),          # b2
                pl.BlockSpec((1, ips * Lpad), lambda g: (0, 0)),  # interior mask
            ],
            out_specs=pl.BlockSpec((1, ips, Cp, Lpad), lambda g: (g, 0, 0, 0)),
        ),
        compiler_params=pltpu.CompilerParams(
            dimension_semantics=("parallel",)),
        cost_estimate=pl.CostEstimate(
            flops=flops, transcendentals=0, bytes_accessed=bytes_accessed),
    )(xp, w1m, b1c, w2m, b2c, interior)

    # Drop channel / lane padding and the 1-pixel halo.
    out = out.reshape(N, Cp, Lpad)[:, :C, :L]
    return out.reshape(N, C, Hp, Wp)[:, :, 1:H + 1, 1:W + 1]


def _reference_nchw(x, w1, b1, w2, b2):
    """Pure-JAX f32 reference matching the PyTorch BasicBlock forward (identity shortcut)."""
    dn = jax.lax.conv_dimension_numbers(x.shape, w1.shape,
                                        ("NCHW", "OIHW", "NCHW"))
    h = jax.lax.conv_general_dilated(x, w1, (1, 1), ((1, 1), (1, 1)),
                                     dimension_numbers=dn)
    h = jnp.maximum(h + b1[None, :, None, None], 0.0)
    h = jax.lax.conv_general_dilated(h, w2, (1, 1), ((1, 1), (1, 1)),
                                     dimension_numbers=dn)
    h = h + b2[None, :, None, None]
    return jnp.maximum(h + x, 0.0)   # ReLU AFTER the residual add (BasicBlock)


if __name__ == "__main__":
    key = jax.random.PRNGKey(0)
    k_x, k_w1, k_b1, k_w2, k_b2 = jax.random.split(key, 5)

    N, C, H, W = 2, 4, 16, 16   # in_planes = planes = 4, stride = 1

    x = jax.random.normal(k_x, (N, C, H, W), dtype=jnp.float32)
    w1 = 0.1 * jax.random.normal(k_w1, (C, C, 3, 3), dtype=jnp.float32)
    b1 = 0.1 * jax.random.normal(k_b1, (C,), dtype=jnp.float32)
    w2 = 0.1 * jax.random.normal(k_w2, (C, C, 3, 3), dtype=jnp.float32)
    b2 = 0.1 * jax.random.normal(k_b2, (C,), dtype=jnp.float32)

    out = jax.jit(basic_block_nchw)(x, w1, b1, w2, b2)
    out = jax.block_until_ready(out)

    ref = _reference_nchw(x, w1, b1, w2, b2)
    assert out.shape == (N, C, H, W)
    # Tolerance loosened vs. the f32 reference because the MXU operands are
    # bf16 (accumulation stays f32); a genuinely wrong kernel errs by O(0.5+).
    assert jnp.allclose(out, ref, atol=5e-2, rtol=5e-2), "mismatch vs reference"

    print("KERNEL_OK")
</pallas_src>

<mosaic_0001>
module attributes {stable_mosaic.version = 11 : i64} {
  func.func @_basic_block_kernel(%arg0: i32, %arg1: memref<1x2x8x384xf32, #tpu.memory_space<vmem>>, %arg2: memref<8x72xbf16, #tpu.memory_space<vmem>>, %arg3: memref<8x1xf32, #tpu.memory_space<vmem>>, %arg4: memref<8x72xbf16, #tpu.memory_space<vmem>>, %arg5: memref<8x1xf32, #tpu.memory_space<vmem>>, %arg6: memref<1x768xf32, #tpu.memory_space<vmem>>, %arg7: memref<1x2x8x384xf32, #tpu.memory_space<vmem>>) attributes {dimension_semantics = [#tpu.dimension_semantics<parallel>], iteration_bounds = array<i64: 1>, scalar_prefetch = 0 : i64, scratch_operands = 0 : i64, tpu.core_type = #tpu.core_type<tc>, window_params = [{transform_indices = @transform_0, window_bounds = array<i64: 1, 2, 8, 384>}, {pipeline_mode = #tpu.pipeline_mode<synchronous>, transform_indices = @transform_1, window_bounds = array<i64: 8, 72>}, {pipeline_mode = #tpu.pipeline_mode<synchronous>, transform_indices = @transform_2, window_bounds = array<i64: 8, 1>}, {pipeline_mode = #tpu.pipeline_mode<synchronous>, transform_indices = @transform_3, window_bounds = array<i64: 8, 72>}, {pipeline_mode = #tpu.pipeline_mode<synchronous>, transform_indices = @transform_4, window_bounds = array<i64: 8, 1>}, {pipeline_mode = #tpu.pipeline_mode<synchronous>, transform_indices = @transform_5, window_bounds = array<i64: 1, 768>}, {transform_indices = @transform_6, window_bounds = array<i64: 1, 2, 8, 384>}]} {
    %c0 = arith.constant 0 : index
    %c0_0 = arith.constant 0 : index
    %c0_1 = arith.constant 0 : index
    %c0_2 = arith.constant 0 : index
    %0 = vector.load %arg1[%c0, %c0_0, %c0_1, %c0_2] : memref<1x2x8x384xf32, #tpu.memory_space<vmem>>, vector<1x1x8x384xf32>
    %1 = vector.shape_cast %0 : vector<1x1x8x384xf32> to vector<8x384xf32>
    %c0_3 = arith.constant 0 : index
    %c1 = arith.constant 1 : index
    %c0_4 = arith.constant 0 : index
    %c0_5 = arith.constant 0 : index
    %2 = vector.load %arg1[%c0_3, %c1, %c0_4, %c0_5] : memref<1x2x8x384xf32, #tpu.memory_space<vmem>>, vector<1x1x8x384xf32>
    %3 = vector.shape_cast %2 : vector<1x1x8x384xf32> to vector<8x384xf32>
    %4 = tpu.concatenate %1, %3 in 1 : vector<8x384xf32>, vector<8x384xf32> -> vector<8x768xf32>
    %c0_6 = arith.constant 0 : index
    %c0_7 = arith.constant 0 : index
    %5 = vector.load %arg6[%c0_6, %c0_7] : memref<1x768xf32, #tpu.memory_space<vmem>>, vector<1x768xf32>
    %c0_8 = arith.constant 0 : index
    %c0_9 = arith.constant 0 : index
    %6 = vector.load %arg2[%c0_8, %c0_9] : memref<8x72xbf16, #tpu.memory_space<vmem>>, vector<8x72xbf16>
    %c19_i32 = arith.constant 19 : i32
    %7 = tpu.dynamic_rotate %4 by %c19_i32 dim 1 : vector<8x768xf32>, i32 -> vector<8x768xf32>
    %c18_i32 = arith.constant 18 : i32
    %8 = tpu.dynamic_rotate %4 by %c18_i32 dim 1 : vector<8x768xf32>, i32 -> vector<8x768xf32>
    %c17_i32 = arith.constant 17 : i32
    %9 = tpu.dynamic_rotate %4 by %c17_i32 dim 1 : vector<8x768xf32>, i32 -> vector<8x768xf32>
    %c1_i32 = arith.constant 1 : i32
    %10 = tpu.dynamic_rotate %4 by %c1_i32 dim 1 : vector<8x768xf32>, i32 -> vector<8x768xf32>
    %c767_i32 = arith.constant 767 : i32
    %11 = tpu.dynamic_rotate %4 by %c767_i32 dim 1 : vector<8x768xf32>, i32 -> vector<8x768xf32>
    %c751_i32 = arith.constant 751 : i32
    %12 = tpu.dynamic_rotate %4 by %c751_i32 dim 1 : vector<8x768xf32>, i32 -> vector<8x768xf32>
    %c750_i32 = arith.constant 750 : i32
    %13 = tpu.dynamic_rotate %4 by %c750_i32 dim 1 : vector<8x768xf32>, i32 -> vector<8x768xf32>
    %c749_i32 = arith.constant 749 : i32
    %14 = tpu.dynamic_rotate %4 by %c749_i32 dim 1 : vector<8x768xf32>, i32 -> vector<8x768xf32>
    %15 = tpu.concatenate %7, %8, %9, %10, %4, %11, %12, %13, %14 in 0 : vector<8x768xf32>, vector<8x768xf32>, vector<8x768xf32>, vector<8x768xf32>, vector<8x768xf32>, vector<8x768xf32>, vector<8x768xf32>, vector<8x768xf32>, vector<8x768xf32> -> vector<72x768xf32>
    %16 = arith.truncf %15 : vector<72x768xf32> to vector<72x768xbf16>
    %cst = arith.constant dense<0.000000e+00> : vector<8x768xf32>
    %17 = tpu.matmul %6, %16, %cst {dimension_numbers = #tpu.dot_dimension_numbers<[1], [0], [0], [1], [0, 0, 1, 1], [], []>} : vector<8x72xbf16>, vector<72x768xbf16>, vector<8x768xf32> -> vector<8x768xf32>
    %c0_10 = arith.constant 0 : index
    %c0_11 = arith.constant 0 : index
    %18 = vector.load %arg3[%c0_10, %c0_11] : memref<8x1xf32, #tpu.memory_space<vmem>>, vector<8x1xf32>
    %19 = vector.broadcast %18 : vector<8x1xf32> to vector<8x768xf32>
    %20 = arith.addf %17, %19 : vector<8x768xf32>
    %cst_12 = arith.constant 0.000000e+00 : f32
    %21 = vector.broadcast %cst_12 : f32 to vector<8x768xf32>
    %22 = arith.maximumf %20, %21 : vector<8x768xf32>
    %23 = vector.broadcast %5 : vector<1x768xf32> to vector<8x768xf32>
    %24 = arith.mulf %22, %23 : vector<8x768xf32>
    %c0_13 = arith.constant 0 : index
    %c0_14 = arith.constant 0 : index
    %25 = vector.load %arg4[%c0_13, %c0_14] : memref<8x72xbf16, #tpu.memory_space<vmem>>, vector<8x72xbf16>
    %c19_i32_15 = arith.constant 19 : i32
    %26 = tpu.dynamic_rotate %24 by %c19_i32_15 dim 1 : vector<8x768xf32>, i32 -> vector<8x768xf32>
    %c18_i32_16 = arith.constant 18 : i32
    %27 = tpu.dynamic_rotate %24 by %c18_i32_16 dim 1 : vector<8x768xf32>, i32 -> vector<8x768xf32>
    %c17_i32_17 = arith.constant 17 : i32
    %28 = tpu.dynamic_rotate %24 by %c17_i32_17 dim 1 : vector<8x768xf32>, i32 -> vector<8x768xf32>
    %c1_i32_18 = arith.constant 1 : i32
    %29 = tpu.dynamic_rotate %24 by %c1_i32_18 dim 1 : vector<8x768xf32>, i32 -> vector<8x768xf32>
    %c767_i32_19 = arith.constant 767 : i32
    %30 = tpu.dynamic_rotate %24 by %c767_i32_19 dim 1 : vector<8x768xf32>, i32 -> vector<8x768xf32>
    %c751_i32_20 = arith.constant 751 : i32
    %31 = tpu.dynamic_rotate %24 by %c751_i32_20 dim 1 : vector<8x768xf32>, i32 -> vector<8x768xf32>
    %c750_i32_21 = arith.constant 750 : i32
    %32 = tpu.dynamic_rotate %24 by %c750_i32_21 dim 1 : vector<8x768xf32>, i32 -> vector<8x768xf32>
    %c749_i32_22 = arith.constant 749 : i32
    %33 = tpu.dynamic_rotate %24 by %c749_i32_22 dim 1 : vector<8x768xf32>, i32 -> vector<8x768xf32>
    %34 = tpu.concatenate %26, %27, %28, %29, %24, %30, %31, %32, %33 in 0 : vector<8x768xf32>, vector<8x768xf32>, vector<8x768xf32>, vector<8x768xf32>, vector<8x768xf32>, vector<8x768xf32>, vector<8x768xf32>, vector<8x768xf32>, vector<8x768xf32> -> vector<72x768xf32>
    %35 = arith.truncf %34 : vector<72x768xf32> to vector<72x768xbf16>
    %cst_23 = arith.constant dense<0.000000e+00> : vector<8x768xf32>
    %36 = tpu.matmul %25, %35, %cst_23 {dimension_numbers = #tpu.dot_dimension_numbers<[1], [0], [0], [1], [0, 0, 1, 1], [], []>} : vector<8x72xbf16>, vector<72x768xbf16>, vector<8x768xf32> -> vector<8x768xf32>
    %c0_24 = arith.constant 0 : index
    %c0_25 = arith.constant 0 : index
    %37 = vector.load %arg5[%c0_24, %c0_25] : memref<8x1xf32, #tpu.memory_space<vmem>>, vector<8x1xf32>
    %38 = vector.broadcast %37 : vector<8x1xf32> to vector<8x768xf32>
    %39 = arith.addf %36, %38 : vector<8x768xf32>
    %40 = arith.addf %39, %4 : vector<8x768xf32>
    %cst_26 = arith.constant 0.000000e+00 : f32
    %41 = vector.broadcast %cst_26 : f32 to vector<8x768xf32>
    %42 = arith.maximumf %40, %41 : vector<8x768xf32>
    %43 = vector.extract_strided_slice %42 {offsets = [0, 0], sizes = [8, 384], strides = [1, 1]} : vector<8x768xf32> to vector<8x384xf32>
    %c0_27 = arith.constant 0 : index
    %c0_28 = arith.constant 0 : index
    %c0_29 = arith.constant 0 : index
    %c0_30 = arith.constant 0 : index
    %44 = vector.load %arg7[%c0_27, %c0_28, %c0_29, %c0_30] : memref<1x2x8x384xf32, #tpu.memory_space<vmem>>, vector<1x1x8x384xf32>
    %45 = vector.shape_cast %44 : vector<1x1x8x384xf32> to vector<8x384xf32>
    %46 = vector.shape_cast %43 : vector<8x384xf32> to vector<1x1x8x384xf32>
    tpu.vector_store %arg7[%c0_27, %c0_28, %c0_29, %c0_30], %46 {strides = array<i32>} : memref<1x2x8x384xf32, #tpu.memory_space<vmem>>, vector<1x1x8x384xf32>,
    %47 = vector.extract_strided_slice %42 {offsets = [0, 384], sizes = [8, 384], strides = [1, 1]} : vector<8x768xf32> to vector<8x384xf32>
    %c0_31 = arith.constant 0 : index
    %c1_32 = arith.constant 1 : index
    %c0_33 = arith.constant 0 : index
    %c0_34 = arith.constant 0 : index
    %48 = vector.load %arg7[%c0_31, %c1_32, %c0_33, %c0_34] : memref<1x2x8x384xf32, #tpu.memory_space<vmem>>, vector<1x1x8x384xf32>
    %49 = vector.shape_cast %48 : vector<1x1x8x384xf32> to vector<8x384xf32>
    %50 = vector.shape_cast %47 : vector<8x384xf32> to vector<1x1x8x384xf32>
    tpu.vector_store %arg7[%c0_31, %c1_32, %c0_33, %c0_34], %50 {strides = array<i32>} : memref<1x2x8x384xf32, #tpu.memory_space<vmem>>, vector<1x1x8x384xf32>,
    return
  }
  func.func @transform_0(%arg0: i32) -> (i32, i32, i32, i32) {
    %c0_i32 = arith.constant 0 : i32
    %c0_i32_0 = arith.constant 0 : i32
    %c0_i32_1 = arith.constant 0 : i32
    %c0_i32_2 = arith.constant 0 : i32
    return %arg0, %c0_i32, %c0_i32_0, %c0_i32_1 : i32, i32, i32, i32
  }
  func.func @transform_1(%arg0: i32) -> (i32, i32) {
    %c0_i32 = arith.constant 0 : i32
    %c0_i32_0 = arith.constant 0 : i32
    %c0_i32_1 = arith.constant 0 : i32
    return %c0_i32, %c0_i32_0 : i32, i32
  }
  func.func @transform_2(%arg0: i32) -> (i32, i32) {
    %c0_i32 = arith.constant 0 : i32
    %c0_i32_0 = arith.constant 0 : i32
    %c0_i32_1 = arith.constant 0 : i32
    return %c0_i32, %c0_i32_0 : i32, i32
  }
  func.func @transform_3(%arg0: i32) -> (i32, i32) {
    %c0_i32 = arith.constant 0 : i32
    %c0_i32_0 = arith.constant 0 : i32
    %c0_i32_1 = arith.constant 0 : i32
    return %c0_i32, %c0_i32_0 : i32, i32
  }
  func.func @transform_4(%arg0: i32) -> (i32, i32) {
    %c0_i32 = arith.constant 0 : i32
    %c0_i32_0 = arith.constant 0 : i32
    %c0_i32_1 = arith.constant 0 : i32
    return %c0_i32, %c0_i32_0 : i32, i32
  }
  func.func @transform_5(%arg0: i32) -> (i32, i32) {
    %c0_i32 = arith.constant 0 : i32
    %c0_i32_0 = arith.constant 0 : i32
    %c0_i32_1 = arith.constant 0 : i32
    return %c0_i32, %c0_i32_0 : i32, i32
  }
  func.func @transform_6(%arg0: i32) -> (i32, i32, i32, i32) {
    %c0_i32 = arith.constant 0 : i32
    %c0_i32_0 = arith.constant 0 : i32
    %c0_i32_1 = arith.constant 0 : i32
    %c0_i32_2 = arith.constant 0 : i32
    return %arg0, %c0_i32, %c0_i32_0, %c0_i32_1 : i32, i32, i32, i32
  }
}

</mosaic_0001>

<bundles_post_ra>
// kernel: basic_block_nchw.1
= control target key start
LH: loop header
LB: loop body
LE: loop exit
PB: predicated region body
PF: predicated region fallthrough
CT: control target
= control target key end

     0   :  { %s990_s29 = smov 19   ;;  %s991_s30 = smov 18   ;;  %v997_v9 = vmov 0   ;;  %v45_v13 = vlaneseq  ;;  %vm227_vm8 = vcmask 1043456   ;;  %vm223_vm9 = vcmask 588800   ;;  %s1682_s0 = inlined_call_operand.vmem [shape: f32[1,2,8,384], index: 0, kind: input, shape index: {}]   ;;  %s1683_s2 = inlined_call_operand.vmem [shape: f32[8,1], index: 2, kind: input, shape index: {}]   ;;  %s1684_s1 = inlined_call_operand.vmem [shape: bf16[8,72], index: 1, kind: input, shape index: {}]   ;;  %s1685_s5 = inlined_call_operand.vmem [shape: f32[1,768], index: 5, kind: input, shape index: {}]   ;;  %s1686_s4 = inlined_call_operand.vmem [shape: f32[8,1], index: 4, kind: input, shape index: {}]   ;;  %s1687_s3 = inlined_call_operand.vmem [shape: bf16[8,72], index: 3, kind: input, shape index: {}]   ;;  %s1688_s6 = inlined_call_operand.vmem [shape: f32[1,2,8,384], index: 6, kind: output, shape index: {}]  }
   0x1   :  { %v1037_v0 = vld [vmem:[%s1682_s0 + $0x20] sm:$0xff]  ;;  %v1042_v1 = vld [vmem:[%s1682_s0 + $0x28] sm:$0xff]  ;;  %s992_s7 = smov 1   ;;  %s993_s8 = smov 17   ;;  %v1067_v6 = vld [vmem:[%s1682_s0 + $0x10] sm:$0xff]  ;;  %278 = vmatprep.mubr.bf16.mxu0 %v997_v9  ;;  %319 = vmatprep.mubr.bf16.mxu1 %v997_v9 }
   0x2   :  { %v1047_v2 = vld [vmem:[%s1682_s0] sm:$0xff]  ;;  %v797_v3 = vpack.i.bf16 %v1037_v0, %v1042_v1  ;;  %v1054_v4 = vld [vmem:[%s1682_s0 + $0x8] sm:$0xff]  ;;  %s994_s11 = smov 127   ;;  %s995_s12 = smov 110   ;;  %v1085_v8 = vld [vmem:[%s1682_s0 + $0x18] sm:$0xff]  ;;  %887 = vset.pattern.permute.xlu0 %v997_v9  ;;  %983 = vset.pattern.permute.xlu1 %v997_v9  ;;  %v882_v11 = vpack.i.bf16 %v1042_v1, %v1037_v0  ;;  %v1122_v16 = vand.u32 127, %v45_v13 }
   0x3   :  { %v787_v5 = vpack.i.bf16 %v1054_v4, %v1047_v2  ;;  %v827_v7 = vpack.i.bf16 %v1067_v6, %v1054_v4  ;;  %s996_s13 = smov 111   ;;  %s998_s16 = smov 109   ;;  %v852_v10 = vpack.i.bf16 %v1067_v6, %v1085_v8  ;;  %v217_v12 = vld [vmem:[%s1683_s2] sm:$0xff] }
   0x4   :  { %798 = vrot.lane.b32.xlu1 %v797_v3, %s990_s29  ;;  %vm47_vm0 = vcmp.lt.s32.totalorder %v1122_v16, 19  ;;  %vm66_vm1 = vcmp.lt.s32.totalorder %v1122_v16, 18  ;;  %vm85_vm2 = vcmp.lt.s32.totalorder %v1122_v16, 17  ;;  %vm104_vm3 = vcmp.lt.s32.totalorder %v1122_v16, 1 }
   0x5   :  { %788 = vrot.lane.b32.xlu0 %v787_v5, %s990_s29  ;;  %vm123_vm4 = vcmp.lt.s32.totalorder %v1122_v16, 127  ;;  %vm161_vm5 = vcmp.lt.s32.totalorder %v1122_v16, 110  ;;  %vm142_vm6 = vcmp.lt.s32.totalorder %v1122_v16, 111  ;;  %vm180_vm7 = vcmp.lt.s32.totalorder %v1122_v16, 109 }
   0x8   :  { %803 = vrot.lane.b32.xlu1 %v797_v3, %s991_s30 }
   0x9   :  { %793 = vrot.lane.b32.xlu0 %v787_v5, %s991_s30 }
   0xc   :  { %813 = vrot.lane.b32.xlu1 %v787_v5, %s992_s7 }
   0xd   :  { %808 = vrot.lane.b32.xlu0 %v787_v5, %s993_s8 }
  0x10   :  { %823 = vrot.lane.b32.xlu1 %v797_v3, %s992_s7 }
  0x11   :  { %818 = vrot.lane.b32.xlu0 %v797_v3, %s993_s8 }
  0x14   :  { %111 = vrot.lane.b32.xlu1 %v1047_v2, %s994_s11 }
  0x15   :  { %828 = vrot.lane.b32.xlu0 %v827_v7, %s994_s11 }
  0x18   :  { %838 = vrot.lane.b32.xlu1 %v827_v7, %s995_s12 }
  0x19   :  { %833 = vrot.lane.b32.xlu0 %v827_v7, %s996_s13 }
  0x1c   :  { %149 = vrot.lane.b32.xlu1 %v1047_v2, %s995_s12 }
  0x1d   :  { %130 = vrot.lane.b32.xlu0 %v1047_v2, %s996_s13 }
  0x20   :  { %172 = vrot.lane.b32.xlu1 %v1067_v6, %s998_s16 }
  0x21   :  { %843 = vrot.lane.b32.xlu0 %v787_v5, %s998_s16 }
  0x24   :  { %853 = vrot.lane.b32.xlu1 %v852_v10, %s991_s30 }
  0x25   :  { %848 = vrot.lane.b32.xlu0 %v852_v10, %s990_s29 }
  0x28   :  { %863 = vrot.lane.b32.xlu1 %v852_v10, %s992_s7 }
  0x29   :  { %858 = vrot.lane.b32.xlu0 %v852_v10, %s993_s8 }
  0x2c   :  { %873 = vrot.lane.b32.xlu1 %v797_v3, %s996_s13 }
  0x2d   :  { %868 = vrot.lane.b32.xlu0 %v797_v3, %s994_s11 }
  0x30   :  { %117 = vrot.lane.b32.xlu1 %v1085_v8, %s994_s11 }
  0x31   :  { %878 = vrot.lane.b32.xlu0 %v797_v3, %s995_s12 }
  0x34   :  { %136 = vrot.lane.b32.xlu1 %v1085_v8, %s996_s13 }
  0x35   :  { %883 = vrot.lane.b32.xlu0 %v882_v11, %s998_s16 }
  0x38   :  { %174 = vrot.lane.b32.xlu1 %v1085_v8, %s998_s16 }
  0x39   :  { %155 = vrot.lane.b32.xlu0 %v1085_v8, %s995_s12 }
  0x3d   :  { %220 = vperm.xlu0 %887, %v217_v12  }
  0x76   :  { %v1117_v14 = vpop.permute.xlu1 %798 }
  0x77   :  { %v1119_v15 = vpop.permute.xlu0 %788  ;;  %v800_v17 = vunpack.i.l.bf16 %v1117_v14 }
  0x78   :  { %v791_v18 = vunpack.i.h.bf16 %v1119_v15  ;;  %v790_v19 = vunpack.i.l.bf16 %v1119_v15 }
  0x7a   :  { %v1127_v20 = vpop.permute.xlu1 %803  ;;  %v52_v26 = vsel %vm47_vm0, %v790_v19, %v791_v18  ;;  %v53_v28 = vsel %vm47_vm0, %v800_v17, %v790_v19 }
  0x7b   :  { %v805_v21 = vunpack.i.l.bf16 %v1127_v20  ;;  %v1130_v22 = vpop.permute.xlu0 %793  ;;  %v806_v3 = vunpack.i.h.bf16 %v1127_v20 }
  0x7c   :  { %v796_v23 = vunpack.i.h.bf16 %v1130_v22  ;;  %v795_v24 = vunpack.i.l.bf16 %v1130_v22 }
  0x7e   :  { %v1138_v25 = vpop.permute.xlu1 %813  ;;  %v71_v27 = vsel %vm66_vm1, %v795_v24, %v796_v23  ;;  %v72_v29 = vsel %vm66_vm1, %v805_v21, %v795_v24 }
  0x7f   :  { %v816_v30 = vunpack.i.h.bf16 %v1138_v25  ;;  %v815_v31 = vunpack.i.l.bf16 %v1138_v25  ;;  %v1158_v32 = vpop.permute.xlu0 %808  ;;  %v188_v33 = vpack.c.bf16 %v71_v27, %v52_v26  ;;  %v187_v34 = vpack.c.bf16 %v72_v29, %v53_v28 }
  0x80   :  { %v811_v35 = vunpack.i.h.bf16 %v1158_v32  ;;  %v810_v36 = vunpack.i.l.bf16 %v1158_v32  ;;  %v67_v26 = vsel %vm66_vm1, %v806_v3, %v805_v21 }
  0x81   :  { %246 = vmatprep.subr.bf16.mxu0 %v188_v33  ;;  %v109_v37 = vsel %vm104_vm3, %v815_v31, %v816_v30 }
  0x82   :  { %247 = vmatpush1.bf16.msra.mxu0 %v187_v34  ;;  %v1166_v38 = vpop.permute.xlu1 %823  ;;  %v90_v39 = vsel %vm85_vm2, %v810_v36, %v811_v35 }
  0x83   :  { %v825_v40 = vunpack.i.l.bf16 %v1166_v38  ;;  %v1173_v41 = vpop.permute.xlu0 %818  ;;  %v194_v42 = vpack.c.bf16 %v109_v37, %v90_v39  ;;  %v826_v27 = vunpack.i.h.bf16 %v1166_v38 }
  0x84   :  { %v820_v43 = vunpack.i.l.bf16 %v1173_v41  ;;  %v821_v28 = vunpack.i.h.bf16 %v1173_v41 }
  0x85   :  { %248 = vmatprep.subr.bf16.mxu0 %v194_v42  ;;  %v110_v44 = vsel %vm104_vm3, %v825_v40, %v815_v31 }
  0x86   :  { %v1180_v45 = vpop.permute.xlu1 %111  ;;  %v91_v46 = vsel %vm85_vm2, %v820_v43, %v810_v36 }
  0x87   :  { %v1184_v47 = vpop.permute.xlu0 %828  ;;  %v193_v48 = vpack.c.bf16 %v110_v44, %v91_v46  ;;  %v86_v44 = vsel %vm85_vm2, %v821_v28, %v820_v43  ;;  %v105_v46 = vsel %vm104_vm3, %v826_v27, %v825_v40 }
  0x88   :  { %v831_v49 = vunpack.i.h.bf16 %v1184_v47  ;;  %v830_v50 = vunpack.i.l.bf16 %v1184_v47 }
  0x89   :  { %249 = vmatpush1.bf16.msra.mxu0 %v193_v48 }
  0x8a   :  { %v1189_v51 = vpop.permute.xlu1 %838  ;;  %v127_v52 = vsel %vm123_vm4, %v830_v50, %v831_v49  ;;  %v128_v53 = vsel %vm123_vm4, %v1180_v45, %v830_v50 }
  0x8b   :  { %v841_v54 = vunpack.i.h.bf16 %v1189_v51  ;;  %v840_v55 = vunpack.i.l.bf16 %v1189_v51  ;;  %v1202_v56 = vpop.permute.xlu0 %833  ;;  %v200_v57 = vpack.c.bf16 %v127_v52, %v1054_v4  ;;  %v199_v58 = vpack.c.bf16 %v128_v53, %v1047_v2 }
  0x8c   :  { %v836_v59 = vunpack.i.h.bf16 %v1202_v56  ;;  %v835_v60 = vunpack.i.l.bf16 %v1202_v56  ;;  %v801_v2 = vunpack.i.h.bf16 %v1117_v14 }
  0x8d   :  { %250 = vmatprep.subr.bf16.mxu0 %v200_v57  ;;  %v165_v61 = vsel %vm161_vm5, %v840_v55, %v841_v54 }
  0x8e   :  { %251 = vmatpush1.bf16.msra.mxu0 %v199_v58  ;;  %v1212_v62 = vpop.permute.xlu1 %149  ;;  %v146_v63 = vsel %vm142_vm6, %v835_v60, %v836_v59  ;;  %v48_v24 = vsel %vm47_vm0, %v801_v2, %v800_v17 }
  0x8f   :  { %v166_v4 = vsel %vm161_vm5, %v1212_v62, %v840_v55  ;;  %v1223_v5 = vpop.permute.xlu0 %130  ;;  %v206_v7 = vpack.c.bf16 %v165_v61, %v146_v63  ;;  %v192_v20 = vpack.c.bf16 %v67_v26, %v48_v24  ;;  %v1275_v55 = vld [vmem:[%s1684_s1] sm:$0xf] }
  0x90   :  { %v147_v10 = vsel %vm142_vm6, %v1223_v5, %v835_v60 }
  0x91   :  { %v205_v11 = vpack.c.bf16 %v166_v4, %v147_v10  ;;  %252 = vmatprep.subr.bf16.mxu0 %v206_v7  ;;  %v198_v4 = vpack.c.bf16 %v105_v46, %v86_v44 }
  0x92   :  { %v1228_v12 = vpop.permute.xlu1 %172 }
  0x93   :  { %v1231_v19 = vpop.permute.xlu0 %843  ;;  %253 = vmatpush1.bf16.msra.mxu0 %v205_v11 }
  0x94   :  { %v846_v29 = vunpack.i.h.bf16 %v1231_v19  ;;  %v845_v31 = vunpack.i.l.bf16 %v1231_v19 }
  0x96   :  { %v184_v14 = vsel %vm180_vm7, %v846_v29, %v1228_v12  ;;  %v854_v33 = vpop.permute.xlu1 %853  ;;  %v185_v17 = vsel %vm180_vm7, %v845_v31, %v846_v29 }
  0x97   :  { %v212_v21 = vpack.c.bf16 %v184_v14, %v184_v14  ;;  %v856_v34 = vunpack.i.h.bf16 %v854_v33  ;;  %v855_v36 = vunpack.i.l.bf16 %v854_v33  ;;  %v849_v37 = vpop.permute.xlu0 %848  ;;  %v211_v39 = vpack.c.bf16 %v185_v17, %v185_v17 }
  0x98   :  { %v851_v41 = vunpack.i.h.bf16 %v849_v37  ;;  %v850_v42 = vunpack.i.l.bf16 %v849_v37 }
  0x99   :  { %v68_v48 = vsel %vm66_vm1, %v855_v36, %v806_v3  ;;  %763 = vmatprep.subr.msk.bf16.mxu0 %vm227_vm8, %v212_v21  ;;  %v229_v50 = vsel %vm227_vm8, %v211_v39, 0  ;;  %v69_v52 = vsel %vm66_vm1, %v856_v34, %v855_v36  ;;  %v70_v43 = vsel %vm66_vm1, %v796_v23, %v856_v34 }
  0x9a   :  { %v49_v38 = vsel %vm47_vm0, %v850_v42, %v801_v2  ;;  %255 = vmatpush1.bf16.msra.mxu0 %v229_v50  ;;  %v864_v40 = vpop.permute.xlu1 %863  ;;  %v50_v53 = vsel %vm47_vm0, %v851_v41, %v850_v42  ;;  %v51_v22 = vsel %vm47_vm0, %v791_v18, %v851_v41 }
  0x9b   :  { %v191_v23 = vpack.c.bf16 %v68_v48, %v49_v38  ;;  %v866_v57 = vunpack.i.h.bf16 %v864_v40  ;;  %v865_v58 = vunpack.i.l.bf16 %v864_v40  ;;  %v859_v60 = vpop.permute.xlu0 %858  ;;  %328 = vmatprep.subr.bf16.mxu0 %v192_v20  ;;  %v190_v61 = vpack.c.bf16 %v69_v52, %v50_v53 }
  0x9c   :  { %v861_v63 = vunpack.i.h.bf16 %v859_v60  ;;  %v860_v2 = vunpack.i.l.bf16 %v859_v60  ;;  %v189_v3 = vpack.c.bf16 %v70_v43, %v51_v22 }
  0x9d   :  { %v106_v7 = vsel %vm104_vm3, %v865_v58, %v826_v27  ;;  %287 = vmatprep.subr.bf16.mxu1 %v190_v61  ;;  %764 = vmatmul.mubr.msk.bf16.vlgmr.msra.gmra.mrb[0].mxu0 %vm223_vm9, %v1275_v55  ;;  %v107_v15 = vsel %vm104_vm3, %v866_v57, %v865_v58  ;;  %v108_v18 = vsel %vm104_vm3, %v816_v30, %v866_v57 }
  0x9e   :  { %v87_v10 = vsel %vm85_vm2, %v860_v2, %v821_v28  ;;  %288 = vmatpush1.bf16.msra.mxu1 %v189_v3  ;;  %329 = vmatpush1.bf16.msra.mxu0 %v191_v23  ;;  %v874_v11 = vpop.permute.xlu1 %873  ;;  %v88_v24 = vsel %vm85_vm2, %v861_v63, %v860_v2  ;;  %v89_v26 = vsel %vm85_vm2, %v811_v35, %v861_v63  ;;  %v31_v3 = vld [vmem:[%s1685_s5] sm:$0x3f] }
  0x9f   :  { %v197_v27 = vpack.c.bf16 %v106_v7, %v87_v10  ;;  %v876_v29 = vunpack.i.h.bf16 %v874_v11  ;;  %v869_v25 = vpop.permute.xlu0 %868  ;;  %330 = vmatprep.subr.bf16.mxu0 %v198_v4  ;;  %v196_v14 = vpack.c.bf16 %v107_v15, %v88_v24  ;;  %360 = vmatprep.mubr.bf16.mxu0 %v997_v9  ;;  %v875_v30 = vunpack.i.l.bf16 %v874_v11 }
  0xa0   :  { %v871_v28 = vunpack.i.h.bf16 %v869_v25  ;;  %v870_v33 = vunpack.i.l.bf16 %v869_v25  ;;  %v195_v17 = vpack.c.bf16 %v108_v18, %v89_v26 }
  0xa1   :  { %289 = vmatprep.subr.bf16.mxu1 %v196_v14  ;;  %v143_v20 = vsel %vm142_vm6, %v876_v29, %v875_v30  ;;  %v148_v47 = vsel %vm142_vm6, %v875_v30, %v1223_v5 }
  0xa2   :  { %v124_v32 = vsel %vm123_vm4, %v871_v28, %v870_v33  ;;  %290 = vmatpush1.bf16.msra.mxu1 %v195_v17  ;;  %331 = vmatpush1.bf16.msra.mxu0 %v197_v27  ;;  %v118_v35 = vpop.permute.xlu1 %117  ;;  %v129_v21 = vsel %vm123_vm4, %v870_v33, %v1180_v45 }
  0xa3   :  { %v203_v34 = vpack.c.bf16 %v124_v32, %v1037_v0  ;;  %v125_v36 = vsel %vm123_vm4, %v118_v35, %v871_v28  ;;  %v126_v37 = vsel %vm123_vm4, %v831_v49, %v118_v35  ;;  %v879_v39 = vpop.permute.xlu0 %878  ;;  %v204_v41 = vpack.c.bf16 %v129_v21, %v1042_v1 }
  0xa4   :  { %v201_v42 = vpack.c.bf16 %v126_v37, %v1067_v6  ;;  %v202_v44 = vpack.c.bf16 %v125_v36, %v1085_v8  ;;  %v881_v46 = vunpack.i.h.bf16 %v879_v39  ;;  %v880_v48 = vunpack.i.l.bf16 %v879_v39 }
  0xa5   :  { %332 = vmatprep.subr.bf16.mxu0 %v204_v41 }
  0xa6   :  { %v162_v0 = vsel %vm161_vm5, %v881_v46, %v880_v48  ;;  %333 = vmatpush1.bf16.msra.mxu0 %v203_v34  ;;  %v137_v45 = vpop.permute.xlu1 %136  ;;  %291 = vmatprep.subr.bf16.mxu1 %v202_v44  ;;  %v167_v1 = vsel %vm161_vm5, %v880_v48, %v1212_v62 }
  0xa7   :  { %v209_v6 = vpack.c.bf16 %v162_v0, %v143_v20  ;;  %v884_v49 = vpop.permute.xlu0 %883  ;;  %292 = vmatpush1.bf16.msra.mxu1 %v201_v42  ;;  %v210_v8 = vpack.c.bf16 %v167_v1, %v148_v47  ;;  %v144_v62 = vsel %vm142_vm6, %v137_v45, %v876_v29  ;;  %v145_v40 = vsel %vm142_vm6, %v836_v59, %v137_v45 }
  0xa8   :  { %v886_v50 = vunpack.i.h.bf16 %v884_v49  ;;  %v885_v52 = vunpack.i.l.bf16 %v884_v49 }
  0xa9   :  { %334 = vmatprep.subr.bf16.mxu0 %v210_v8 }
  0xaa   :  { %v186_v43 = vsel %vm180_vm7, %v886_v50, %v845_v31  ;;  %335 = vmatpush1.bf16.msra.mxu0 %v209_v6  ;;  %v175_v38 = vpop.permute.xlu1 %174  ;;  %v181_v5 = vsel %vm180_vm7, %v885_v52, %v886_v50 }
  0xab   :  { %v216_v53 = vpack.c.bf16 %v186_v43, %v186_v43  ;;  %v156_v22 = vpop.permute.xlu0 %155  ;;  %v215_v23 = vpack.c.bf16 %v181_v5, %v181_v5  ;;  %v182_v19 = vsel %vm180_vm7, %v175_v38, %v885_v52  ;;  %v183_v31 = vsel %vm180_vm7, %v1228_v12, %v175_v38 }
  0xac   :  { %v163_v57 = vsel %vm161_vm5, %v156_v22, %v881_v46  ;;  %v164_v56 = vsel %vm161_vm5, %v841_v54, %v156_v22  ;;  %v213_v61 = vpack.c.bf16 %v183_v31, %v183_v31  ;;  %v214_v63 = vpack.c.bf16 %v182_v19, %v182_v19  ;;  %v587_v22 = vld [vmem:[%s1686_s4] sm:$0xff] }
  0xad   :  { %v207_v58 = vpack.c.bf16 %v164_v56, %v145_v40  ;;  %v208_v59 = vpack.c.bf16 %v163_v57, %v144_v62  ;;  %767 = vmatprep.subr.msk.bf16.mxu0 %vm227_vm8, %v216_v53  ;;  %v241_v60 = vsel %vm227_vm8, %v215_v23, 0  ;;  %v377_v54 = vshrl.u32 %v45_v13, 7 }
  0xae   :  { %337 = vmatpush1.bf16.msra.mxu0 %v241_v60  ;;  %v235_v51 = vsel %vm227_vm8, %v213_v61, 0 }
  0xaf   :  { %293 = vmatprep.subr.bf16.mxu1 %v208_v59  ;;  %v378_v12 = vsub.s32 0, %v377_v54  ;;  %v382_v4 = vsub.s32 1, %v377_v54  ;;  %v386_v17 = vsub.s32 2, %v377_v54  ;;  %v398_v21 = vsub.s32 5, %v377_v54 }
  0xb0   :  { %294 = vmatpush1.bf16.msra.mxu1 %v207_v58  ;;  %v390_v6 = vsub.s32 3, %v377_v54  ;;  %v394_v8 = vsub.s32 4, %v377_v54 }
  0xb1   :  { %765 = vmatprep.subr.msk.bf16.mxu1 %vm227_vm8, %v214_v63  ;;  %768 = vmatmul.mubr.msk.bf16.vlgmr.msra.gmra.mrb[4].mxu0 %vm223_vm9, %v1275_v55  ;;  %v379_v18 = vrot.slane %v31_v3, %v378_v12  ;;  %v383_v24 = vrot.slane %v31_v3, %v382_v4  ;;  %v387_v36 = vrot.slane %v31_v3, %v386_v17 }
  0xb2   :  { %687 = vmatprep.mubr.bf16.mxu0 %v997_v9  ;;  %v399_v46 = vrot.slane %v31_v3, %v398_v21  ;;  %v391_v52 = vrot.slane %v31_v3, %v390_v6  ;;  %v395_v38 = vrot.slane %v31_v3, %v394_v8 }
  0xb4   :  { %296 = vmatpush1.bf16.msra.mxu1 %v235_v51 }
  0xb7   :  { %766 = vmatmul.mubr.msk.bf16.vlgmr.msra.gmra.mrb[0].mxu1 %vm223_vm9, %v1275_v55 }
  0xb8   :  { %646 = vmatprep.mubr.bf16.mxu1 %v997_v9 }
  0xbc   :  { %v221_v2 = vpop.permute.xlu0 %220 }
 0x170   :  { %v280_v7 = vpop.f32.mrb[0].mxu0 }
 0x171   :  { %v281_v15 = vadd.f32 %v280_v7, %v221_v2  ;;  %v282_v10 = vpop.f32.mrb[1].mxu0 }
 0x172   :  { %v283_v11 = vadd.f32 %v282_v10, %v221_v2  ;;  %v284_v26 = vpop.f32.mrb[2].mxu0 }
 0x173   :  { %v369_v27 = vmax.f32 %v281_v15, 0.0  ;;  %v285_v55 = vpop.f32.mrb[3].mxu0 }
 0x174   :  { %v370_v29 = vmax.f32 %v283_v11, 0.0 }
 0x175   :  { %v1362_v25 = vmul.f32 %v379_v18, %v369_v27 }
 0x176   :  { %v1364_v13 = vmul.f32 %v383_v24, %v370_v29 }
 0x177   :  { %485 = vrot.lane.b32.xlu1 %v1362_v25, %s994_s11  ;;  %503 = vrot.lane.b32.xlu0 %v1362_v25, %s996_s13 }
 0x178   :  { %v888_v14 = vpack.i.bf16 %v1364_v13, %v1362_v25 }
 0x17b   :  { %889 = vrot.lane.b32.xlu1 %v888_v14, %s990_s29  ;;  %899 = vrot.lane.b32.xlu0 %v888_v14, %s993_s8 }
 0x17f   :  { %894 = vrot.lane.b32.xlu1 %v888_v14, %s991_s30 }
 0x183   :  { %904 = vrot.lane.b32.xlu1 %v888_v14, %s992_s7 }
 0x184   :  { %v362_v30 = vpop.f32.mrb[4].mxu0 }
 0x185   :  { %v364_v28 = vpop.f32.mrb[5].mxu0  ;;  %v363_v49 = vadd.f32 %v362_v30, %v221_v2 }
 0x186   :  { %v366_v33 = vpop.f32.mrb[6].mxu0  ;;  %v365_v35 = vadd.f32 %v364_v28, %v221_v2 }
 0x187   :  { %v367_v20 = vpop.f32.mrb[7].mxu0  ;;  %v373_v43 = vmax.f32 %v363_v49, 0.0 }
 0x188   :  { %v374_v44 = vmax.f32 %v365_v35, 0.0 }
 0x189   :  { %v1396_v62 = vmul.f32 %v395_v38, %v373_v43 }
 0x18a   :  { %v321_v32 = vpop.f32.mrb[0].mxu1  ;;  %v1380_v45 = vmul.f32 %v399_v46, %v374_v44 }
 0x18b   :  { %v322_v34 = vadd.f32 %v321_v32, %v221_v2  ;;  %v323_v37 = vpop.f32.mrb[1].mxu1 }
 0x18c   :  { %v325_v39 = vpop.f32.mrb[2].mxu1  ;;  %v324_v1 = vadd.f32 %v323_v37, %v221_v2 }
 0x18d   :  { %v371_v41 = vmax.f32 %v322_v34, 0.0  ;;  %v326_v42 = vpop.f32.mrb[3].mxu1 }
 0x18e   :  { %v372_v50 = vmax.f32 %v324_v1, 0.0 }
 0x18f   :  { %v1376_v48 = vmul.f32 %v387_v36, %v371_v41 }
 0x190   :  { %v1394_v5 = vmul.f32 %v391_v52, %v372_v50 }
 0x191   :  { %v908_v0 = vpack.i.bf16 %v1376_v48, %v1364_v13  ;;  %v928_v47 = vpack.i.bf16 %v1376_v48, %v1380_v45 }
 0x192   :  { %v943_v40 = vpack.i.bf16 %v1396_v62, %v1394_v5  ;;  %v958_v53 = vpack.i.bf16 %v1394_v5, %v1376_v48 }
 0x193   :  { %909 = vrot.lane.b32.xlu0 %v908_v0, %s994_s11  ;;  %919 = vrot.lane.b32.xlu1 %v908_v0, %s995_s12 }
 0x197   :  { %914 = vrot.lane.b32.xlu0 %v908_v0, %s996_s13  ;;  %929 = vrot.lane.b32.xlu1 %v928_v47, %s991_s30 }
 0x19b   :  { %924 = vrot.lane.b32.xlu0 %v928_v47, %s990_s29  ;;  %477 = vrot.lane.b32.xlu1 %v1380_v45, %s992_s7 }
 0x19f   :  { %934 = vrot.lane.b32.xlu0 %v928_v47, %s993_s8  ;;  %521 = vrot.lane.b32.xlu1 %v1362_v25, %s995_s12 }
 0x1a3   :  { %939 = vrot.lane.b32.xlu0 %v888_v14, %s998_s16  ;;  %543 = vrot.lane.b32.xlu1 %v1376_v48, %s998_s16 }
 0x1a7   :  { %944 = vrot.lane.b32.xlu0 %v943_v40, %s990_s29  ;;  %949 = vrot.lane.b32.xlu1 %v943_v40, %s991_s30 }
 0x1ab   :  { %954 = vrot.lane.b32.xlu0 %v943_v40, %s993_s8  ;;  %959 = vrot.lane.b32.xlu1 %v958_v53, %s992_s7 }
 0x1af   :  { %475 = vrot.lane.b32.xlu0 %v1396_v62, %s992_s7  ;;  %964 = vrot.lane.b32.xlu1 %v943_v40, %s994_s11 }
 0x1b3   :  { %495 = vrot.lane.b32.xlu0 %v1380_v45, %s994_s11  ;;  %969 = vrot.lane.b32.xlu1 %v943_v40, %s996_s13 }
 0x1b7   :  { %513 = vrot.lane.b32.xlu0 %v1380_v45, %s996_s13  ;;  %974 = vrot.lane.b32.xlu1 %v943_v40, %s995_s12 }
 0x1bb   :  { %531 = vrot.lane.b32.xlu0 %v1380_v45, %s995_s12  ;;  %979 = vrot.lane.b32.xlu1 %v943_v40, %s998_s16 }
 0x1bf   :  { %549 = vrot.lane.b32.xlu0 %v1380_v45, %s998_s16  ;;  %590 = vperm.xlu1 %983, %v587_v22  }
 0x1e9   :  { %v1426_v23 = vpop.permute.xlu1 %485  ;;  %v1438_v51 = vpop.permute.xlu0 %503 }
 0x1ed   :  { %v1428_v19 = vpop.permute.xlu1 %889  ;;  %v1440_v54 = vpop.permute.xlu0 %899 }
 0x1ee   :  { %v892_v31 = vunpack.i.h.bf16 %v1428_v19  ;;  %v891_v57 = vunpack.i.l.bf16 %v1428_v19  ;;  %v902_v4 = vunpack.i.h.bf16 %v1440_v54  ;;  %v901_v7 = vunpack.i.l.bf16 %v1440_v54 }
 0x1f0   :  { %v429_v60 = vsel %vm47_vm0, %v891_v57, %v892_v31  ;;  %v465_v55 = vsel %vm85_vm2, %v901_v7, %v902_v4 }
 0x1f1   :  { %v895_v56 = vpop.permute.xlu1 %894 }
 0x1f2   :  { %v897_v58 = vunpack.i.h.bf16 %v895_v56  ;;  %v896_v59 = vunpack.i.l.bf16 %v895_v56 }
 0x1f4   :  { %v447_v61 = vsel %vm66_vm1, %v896_v59, %v897_v58 }
 0x1f5   :  { %v558_v63 = vpack.c.bf16 %v447_v61, %v429_v60  ;;  %v1442_v12 = vpop.permute.xlu1 %904 }
 0x1f6   :  { %v907_v10 = vunpack.i.h.bf16 %v1442_v12  ;;  %v906_v11 = vunpack.i.l.bf16 %v1442_v12 }
 0x1f7   :  { %614 = vmatprep.subr.bf16.mxu1 %v558_v63 }
 0x1f8   :  { %v483_v28 = vsel %vm104_vm3, %v906_v11, %v907_v10 }
 0x1f9   :  { %v564_v21 = vpack.c.bf16 %v483_v28, %v465_v55 }
 0x205   :  { %v1444_v2 = vpop.permute.xlu0 %909  ;;  %v1446_v3 = vpop.permute.xlu1 %919 }
 0x206   :  { %v912_v29 = vunpack.i.h.bf16 %v1444_v2  ;;  %v911_v14 = vunpack.i.l.bf16 %v1444_v2  ;;  %v922_v41 = vunpack.i.h.bf16 %v1446_v3  ;;  %v921_v42 = vunpack.i.l.bf16 %v1446_v3 }
 0x208   :  { %v500_v39 = vsel %vm123_vm4, %v911_v14, %v912_v29  ;;  %v501_v0 = vsel %vm123_vm4, %v1426_v23, %v911_v14  ;;  %v536_v40 = vsel %vm161_vm5, %v921_v42, %v922_v41 }
 0x209   :  { %v1450_v15 = vpop.permute.xlu0 %914  ;;  %v1452_v18 = vpop.permute.xlu1 %929  ;;  %v570_v8 = vpack.c.bf16 %v500_v39, %v1364_v13  ;;  %v569_v13 = vpack.c.bf16 %v501_v0, %v1362_v25 }
 0x20a   :  { %v931_v24 = vunpack.i.l.bf16 %v1452_v18  ;;  %v917_v34 = vunpack.i.h.bf16 %v1450_v15  ;;  %v916_v36 = vunpack.i.l.bf16 %v1450_v15  ;;  %v932_v47 = vunpack.i.h.bf16 %v1452_v18 }
 0x20c   :  { %v448_v33 = vsel %vm66_vm1, %v931_v24, %v896_v59  ;;  %v518_v38 = vsel %vm142_vm6, %v916_v36, %v917_v34  ;;  %v446_v53 = vsel %vm66_vm1, %v897_v58, %v932_v47  ;;  %v519_v58 = vsel %vm142_vm6, %v1438_v51, %v916_v36 }
 0x20d   :  { %v1457_v26 = vpop.permute.xlu0 %924  ;;  %v1459_v27 = vpop.permute.xlu1 %477  ;;  %v576_v56 = vpack.c.bf16 %v536_v40, %v518_v38 }
 0x20e   :  { %v926_v30 = vunpack.i.l.bf16 %v1457_v26  ;;  %v484_v44 = vsel %vm104_vm3, %v1459_v27, %v906_v11  ;;  %v927_v50 = vunpack.i.h.bf16 %v1457_v26 }
 0x210   :  { %v430_v17 = vsel %vm47_vm0, %v926_v30, %v891_v57  ;;  %v428_v60 = vsel %vm47_vm0, %v892_v31, %v927_v50 }
 0x211   :  { %v557_v20 = vpack.c.bf16 %v448_v33, %v430_v17  ;;  %v1480_v32 = vpop.permute.xlu0 %934  ;;  %v1482_v35 = vpop.permute.xlu1 %521  ;;  %v559_v33 = vpack.c.bf16 %v446_v53, %v428_v60 }
 0x212   :  { %v936_v37 = vunpack.i.l.bf16 %v1480_v32  ;;  %v537_v25 = vsel %vm161_vm5, %v1482_v35, %v921_v42  ;;  %v937_v19 = vunpack.i.h.bf16 %v1480_v32 }
 0x213   :  { %615 = vmatpush1.bf16.msra.mxu1 %v557_v20  ;;  %v575_v17 = vpack.c.bf16 %v537_v25, %v519_v58 }
 0x214   :  { %v466_v46 = vsel %vm85_vm2, %v936_v37, %v901_v7  ;;  %616 = vmatprep.subr.bf16.mxu1 %v564_v21 }
 0x215   :  { %v563_v1 = vpack.c.bf16 %v484_v44, %v466_v46  ;;  %v1504_v6 = vpop.permute.xlu0 %939  ;;  %v1506_v49 = vpop.permute.xlu1 %543 }
 0x216   :  { %v942_v52 = vunpack.i.h.bf16 %v1504_v6  ;;  %v941_v43 = vunpack.i.l.bf16 %v1504_v6 }
 0x217   :  { %617 = vmatpush1.bf16.msra.mxu1 %v563_v1  ;;  %v464_v1 = vsel %vm85_vm2, %v902_v4, %v937_v19 }
 0x218   :  { %618 = vmatprep.subr.bf16.mxu1 %v570_v8  ;;  %v555_v59 = vsel %vm180_vm7, %v941_v43, %v942_v52  ;;  %v554_v7 = vsel %vm180_vm7, %v942_v52, %v1506_v49 }
 0x219   :  { %v945_v22 = vpop.permute.xlu0 %944  ;;  %v950_v57 = vpop.permute.xlu1 %949  ;;  %v581_v28 = vpack.c.bf16 %v555_v59, %v555_v59  ;;  %v582_v39 = vpack.c.bf16 %v554_v7, %v554_v7 }
 0x21a   :  { %v946_v61 = vunpack.i.l.bf16 %v945_v22  ;;  %v951_v63 = vunpack.i.l.bf16 %v950_v57  ;;  %v947_v11 = vunpack.i.h.bf16 %v945_v22  ;;  %v952_v55 = vunpack.i.h.bf16 %v950_v57  ;;  %v1577_v22 = vld [vmem:[%s1687_s3] sm:$0xf] }
 0x21b   :  { %619 = vmatpush1.bf16.msra.mxu1 %v569_v13  ;;  %v597_v18 = vsel %vm227_vm8, %v581_v28, 0 }
 0x21c   :  { %620 = vmatprep.subr.bf16.mxu1 %v576_v56  ;;  %v427_v31 = vsel %vm47_vm0, %v927_v50, %v946_v61  ;;  %v445_v14 = vsel %vm66_vm1, %v932_v47, %v951_v63  ;;  %v425_v0 = vsel %vm47_vm0, %v947_v11, %v926_v30  ;;  %v443_v47 = vsel %vm66_vm1, %v952_v55, %v931_v24 }
 0x21d   :  { %v955_v20 = vpop.permute.xlu0 %954  ;;  %v960_v21 = vpop.permute.xlu1 %959  ;;  %v560_v36 = vpack.c.bf16 %v445_v14, %v427_v31  ;;  %v426_v8 = vsel %vm47_vm0, %v946_v61, %v947_v11  ;;  %v444_v24 = vsel %vm66_vm1, %v951_v63, %v952_v55  ;;  %v562_v40 = vpack.c.bf16 %v443_v47, %v425_v0 }
 0x21e   :  { %v956_v42 = vunpack.i.l.bf16 %v955_v20  ;;  %v962_v44 = vunpack.i.h.bf16 %v960_v21  ;;  %v961_v46 = vunpack.i.l.bf16 %v960_v21  ;;  %v957_v54 = vunpack.i.h.bf16 %v955_v20 }
 0x21f   :  { %621 = vmatpush1.bf16.msra.mxu1 %v575_v17  ;;  %655 = vmatprep.subr.bf16.mxu0 %v560_v36  ;;  %v561_v59 = vpack.c.bf16 %v444_v24, %v426_v8 }
 0x220   :  { %v482_v26 = vsel %vm104_vm3, %v907_v10, %v961_v46  ;;  %769 = vmatprep.subr.msk.bf16.mxu1 %vm227_vm8, %v582_v39  ;;  %656 = vmatpush1.bf16.msra.mxu0 %v559_v33  ;;  %v463_v4 = vsel %vm85_vm2, %v937_v19, %v956_v42  ;;  %v481_v12 = vsel %vm104_vm3, %v961_v46, %v962_v44 }
 0x221   :  { %v476_v30 = vpop.permute.xlu0 %475  ;;  %v965_v50 = vpop.permute.xlu1 %964  ;;  %v565_v52 = vpack.c.bf16 %v482_v26, %v464_v1  ;;  %v566_v53 = vpack.c.bf16 %v481_v12, %v463_v4  ;;  %v984_v4 = vld [vmem:[%s1682_s0] sm:$0xff] }
 0x222   :  { %v967_v38 = vunpack.i.h.bf16 %v965_v50  ;;  %v966_v10 = vunpack.i.l.bf16 %v965_v50  ;;  %v479_v13 = vsel %vm104_vm3, %v476_v30, %v1459_v27  ;;  %v461_v27 = vsel %vm85_vm2, %v957_v54, %v936_v37 }
 0x223   :  { %623 = vmatpush1.bf16.msra.mxu1 %v597_v18  ;;  %657 = vmatprep.subr.bf16.mxu0 %v566_v53  ;;  %v480_v2 = vsel %vm104_vm3, %v962_v44, %v476_v30  ;;  %v568_v63 = vpack.c.bf16 %v479_v13, %v461_v27  ;;  %v462_v37 = vsel %vm85_vm2, %v956_v42, %v957_v54  ;;  %v986_v27 = vld [vmem:[%s1682_s0 + $0x10] sm:$0xff] }
 0x224   :  { %v499_v57 = vsel %vm123_vm4, %v912_v29, %v966_v10  ;;  %696 = vmatprep.subr.bf16.mxu1 %v562_v40  ;;  %v498_v56 = vsel %vm123_vm4, %v966_v10, %v967_v38  ;;  %658 = vmatpush1.bf16.msra.mxu0 %v565_v52  ;;  %v567_v7 = vpack.c.bf16 %v480_v2, %v462_v37  ;;  %v987_v2 = vld [vmem:[%s1682_s0 + $0x18] sm:$0xff] }
 0x225   :  { %v496_v60 = vpop.permute.xlu0 %495  ;;  %v970_v25 = vpop.permute.xlu1 %969  ;;  %v572_v61 = vpack.c.bf16 %v498_v56, %v1394_v5  ;;  %v571_v29 = vpack.c.bf16 %v499_v57, %v1376_v48 }
 0x226   :  { %770 = vmatmul.mubr.msk.bf16.vlgmr.msra.gmra.mrb[4].mxu1 %vm223_vm9, %v1577_v22  ;;  %v502_v32 = vsel %vm123_vm4, %v496_v60, %v1426_v23  ;;  %v972_v5 = vunpack.i.h.bf16 %v970_v25  ;;  %v971_v58 = vunpack.i.l.bf16 %v970_v25  ;;  %v497_v55 = vsel %vm123_vm4, %v967_v38, %v496_v60  ;;  %v985_v38 = vld [vmem:[%s1682_s0 + $0x8] sm:$0xff] }
 0x227   :  { %659 = vmatprep.subr.bf16.mxu0 %v572_v61  ;;  %697 = vmatpush1.bf16.msra.mxu1 %v561_v59  ;;  %v574_v19 = vpack.c.bf16 %v502_v32, %v1380_v45  ;;  %v573_v33 = vpack.c.bf16 %v497_v55, %v1396_v62 }
 0x228   :  { %698 = vmatprep.subr.bf16.mxu1 %v568_v63  ;;  %728 = vmatprep.mubr.bf16.mxu1 %v997_v9  ;;  %v517_v14 = vsel %vm142_vm6, %v917_v34, %v971_v58  ;;  %v516_v28 = vsel %vm142_vm6, %v971_v58, %v972_v5 }
 0x229   :  { %v514_v48 = vpop.permute.xlu0 %513  ;;  %v975_v11 = vpop.permute.xlu1 %974  ;;  %660 = vmatpush1.bf16.msra.mxu0 %v571_v29 }
 0x22a   :  { %v977_v23 = vunpack.i.h.bf16 %v975_v11  ;;  %v976_v31 = vunpack.i.l.bf16 %v975_v11  ;;  %v520_v15 = vsel %vm142_vm6, %v514_v48, %v1438_v51  ;;  %v515_v62 = vsel %vm142_vm6, %v972_v5, %v514_v48  ;;  %v988_v48 = vld [vmem:[%s1682_s0 + $0x20] sm:$0xff] }
 0x22b   :  { %699 = vmatpush1.bf16.msra.mxu1 %v567_v7 }
 0x22c   :  { %v535_v9 = vsel %vm161_vm5, %v922_v41, %v976_v31  ;;  %700 = vmatprep.subr.bf16.mxu1 %v574_v19  ;;  %v534_v45 = vsel %vm161_vm5, %v976_v31, %v977_v23  ;;  %v989_v19 = vld [vmem:[%s1682_s0 + $0x28] sm:$0xff] }
 0x22d   :  { %v577_v17 = vpack.c.bf16 %v535_v9, %v517_v14  ;;  %v532_v34 = vpop.permute.xlu0 %531  ;;  %v980_v20 = vpop.permute.xlu1 %979  ;;  %v578_v3 = vpack.c.bf16 %v534_v45, %v516_v28 }
 0x22e   :  { %v533_v41 = vsel %vm161_vm5, %v977_v23, %v532_v34  ;;  %v538_v21 = vsel %vm161_vm5, %v532_v34, %v1482_v35  ;;  %v982_v36 = vunpack.i.h.bf16 %v980_v20  ;;  %v981_v39 = vunpack.i.l.bf16 %v980_v20 }
 0x22f   :  { %v580_v42 = vpack.c.bf16 %v538_v21, %v520_v15  ;;  %661 = vmatprep.subr.bf16.mxu0 %v578_v3  ;;  %701 = vmatpush1.bf16.msra.mxu1 %v573_v33  ;;  %v579_v46 = vpack.c.bf16 %v533_v41, %v515_v62 }
 0x230   :  { %v552_v51 = vsel %vm180_vm7, %v981_v39, %v982_v36  ;;  %662 = vmatpush1.bf16.msra.mxu0 %v577_v17  ;;  %v553_v44 = vsel %vm180_vm7, %v1506_v49, %v981_v39 }
 0x231   :  { %v584_v0 = vpack.c.bf16 %v552_v51, %v552_v51  ;;  %v550_v47 = vpop.permute.xlu0 %549  ;;  %702 = vmatprep.subr.bf16.mxu1 %v580_v42  ;;  %v583_v35 = vpack.c.bf16 %v553_v44, %v553_v44 }
 0x232   :  { %v551_v1 = vsel %vm180_vm7, %v982_v36, %v550_v47  ;;  %v556_v8 = vsel %vm180_vm7, %v550_v47, %v941_v43 }
 0x233   :  { %v585_v26 = vpack.c.bf16 %v551_v1, %v551_v1  ;;  %v586_v18 = vpack.c.bf16 %v556_v8, %v556_v8  ;;  %771 = vmatprep.subr.msk.bf16.mxu0 %vm227_vm8, %v584_v0  ;;  %703 = vmatpush1.bf16.msra.mxu1 %v579_v46  ;;  %v603_v49 = vsel %vm227_vm8, %v583_v35, 0 }
 0x234   :  { %664 = vmatpush1.bf16.msra.mxu0 %v603_v49 }
 0x235   :  { %773 = vmatprep.subr.msk.bf16.mxu1 %vm227_vm8, %v586_v18  ;;  %v609_v24 = vsel %vm227_vm8, %v585_v26, 0 }
 0x237   :  { %772 = vmatmul.mubr.msk.bf16.vlgmr.msra.gmra.mrb[8].mxu0 %vm223_vm9, %v1577_v22  ;;  %705 = vmatpush1.bf16.msra.mxu1 %v609_v24 }
 0x23a   :  { %774 = vmatmul.mubr.msk.bf16.vlgmr.msra.gmra.mrb[8].mxu1 %vm223_vm9, %v1577_v22 }
 0x23e   :  { %v591_v16 = vpop.permute.xlu1 %590 }
 0x2f9   :  { %v648_v6 = vpop.f32.mrb[4].mxu1 }
 0x2fa   :  { %v649_v43 = vadd.f32 %v648_v6, %v591_v16  ;;  %v650_v54 = vpop.f32.mrb[5].mxu1 }
 0x2fb   :  { %v651_v30 = vadd.f32 %v650_v54, %v591_v16  ;;  %v652_v50 = vpop.f32.mrb[6].mxu1 }
 0x2fc   :  { %v737_v12 = vadd.f32 %v984_v4, %v649_v43  ;;  %v653_v52 = vpop.f32.mrb[7].mxu1 }
 0x2fd   :  { %v738_v10 = vadd.f32 %v985_v38, %v651_v30 }
 0x2fe   :  { %v743_v40 = vmax.f32 %v737_v12, 0.0 }
 0x2ff   :  { %v744_v13 = vmax.f32 %v738_v10, 0.0 }
 0x300   :  { %749 = vst [vmem:[%s1688_s6] sm:$0xff] %v743_v40 }
 0x301   :  { %750 = vst [vmem:[%s1688_s6 + $0x8] sm:$0xff] %v744_v13 }
 0x30a   :  { %v689_v53 = vpop.f32.mrb[8].mxu0 }
 0x30b   :  { %v690_v22 = vadd.f32 %v689_v53, %v591_v16  ;;  %v691_v57 = vpop.f32.mrb[9].mxu0 }
 0x30c   :  { %v692_v56 = vadd.f32 %v691_v57, %v591_v16  ;;  %v693_v59 = vpop.f32.mrb[10].mxu0 }
 0x30d   :  { %v739_v60 = vadd.f32 %v986_v27, %v690_v22  ;;  %v694_v25 = vpop.f32.mrb[11].mxu0  ;;  %v730_v61 = vpop.f32.mrb[8].mxu1 }
 0x30e   :  { %v740_v63 = vadd.f32 %v987_v2, %v692_v56  ;;  %v731_v29 = vadd.f32 %v730_v61, %v591_v16  ;;  %v732_v32 = vpop.f32.mrb[9].mxu1 }
 0x30f   :  { %v745_v37 = vmax.f32 %v739_v60, 0.0  ;;  %v733_v5 = vadd.f32 %v732_v32, %v591_v16  ;;  %v734_v58 = vpop.f32.mrb[10].mxu1 }
 0x310   :  { %v746_v7 = vmax.f32 %v740_v63, 0.0  ;;  %v741_v11 = vadd.f32 %v988_v48, %v731_v29  ;;  %v735_v55 = vpop.f32.mrb[11].mxu1 }
 0x311   :  { %751 = vst [vmem:[%s1688_s6 + $0x10] sm:$0xff] %v745_v37  ;;  %v742_v23 = vadd.f32 %v989_v19, %v733_v5 }
 0x312   :  { %775 = vst [vmem:[%s1688_s6 + $0x18] sm:$0xff] %v746_v7  ;;  %v747_v31 = vmax.f32 %v741_v11, 0.0 }
 0x313   :  { %v748_v14 = vmax.f32 %v742_v23, 0.0 }
 0x314   :  { %776 = vst [vmem:[%s1688_s6 + $0x20] sm:$0xff] %v747_v31 }
 0x315   :  { %777 = vst [vmem:[%s1688_s6 + $0x28] sm:$0xff] %v748_v14 }

</bundles_post_ra>
